<compile_context>
chip_gen: v6e
topology: v6e:2x2x1
jax: 0.10.0
libtpu: 0.0.40
codegen_flags: <defaults>
</compile_context>

<pallas_src>
import functools

import jax
import jax.numpy as jnp
from jax import lax
from jax.experimental import pallas as pl
from jax.experimental.pallas import tpu as pltpu


# 3 inputs x 2 pipeline buffers total; safe on v5e/v6e (128 MiB VMEM) and v7x
# (64 MiB VMEM per TensorCore), per-step DMA lands in the HBM-roofline sweet
# spot for all three generations.
_PIPELINE_VMEM_BUDGET = 24 * 1024 * 1024
_TB_CAP = 2048


def _round_up(x: int, m: int) -> int:
    return (x + m - 1) // m * m


def _triplet_loss_kernel(a_ref, p_ref, n_ref, o_ref, acc_ref, *,
                         margin: float, true_b: int, true_d: int,
                         block_b: int, block_d: int,
                         need_b_mask: bool, need_d_mask: bool):
    i = pl.program_id(0)   # batch tile   ("parallel")
    j = pl.program_id(1)   # feature tile ("arbitrary", innermost)

    @pl.when(j == 0)
    def _init():
        acc_ref[...] = jnp.zeros_like(acc_ref)

    a = a_ref[...].astype(jnp.float32)
    p = p_ref[...].astype(jnp.float32)
    n = n_ref[...].astype(jnp.float32)

    # Fused elementwise difference-of-squares (VPU) -> ONE cross-lane reduce (XLU).
    d = (a - p) ** 2 - (a - n) ** 2                          # (TB, TD)

    if need_d_mask:
        # Static: only emitted when D % TD != 0.  Padded tail columns of the
        # last feature tile are garbage after the DMA; select semantics keep
        # NaN/Inf out of the accumulator.
        col = j * block_d + lax.broadcasted_iota(jnp.int32, (block_b, block_d), 1)
        d = jnp.where(col < true_d, d, 0.0)

    acc_ref[...] += jnp.sum(d, axis=1, keepdims=True)        # (TB, 1) running dp - dn

    @pl.when(j == pl.num_programs(1) - 1)
    def _finalize():
        losses = jnp.maximum(acc_ref[...] + margin, 0.0)     # relu
        if need_b_mask:
            # Static: only emitted when B % TB != 0.  Garbage tail rows are
            # discarded with a select (NOT a multiplicative mask — NaN*0=NaN).
            row = i * block_b + lax.broadcasted_iota(jnp.int32, (block_b, 1), 0)
            losses = jnp.where(row < true_b, losses, 0.0)
        partial = jnp.sum(losses)
        # Lane-dense (1, 8, 128) block -> unmasked vst, batch axis stays "parallel".
        o_ref[...] = jnp.broadcast_to(partial, (1, 8, 128)).astype(jnp.float32)


def _choose_tiles(b: int, d: int, itemsize: int) -> tuple[int, int]:
    """Pick (TB, TD): dtype-aware, VMEM-budgeted, with >=8 grid steps when possible."""
    per_row_bytes = 6 * d * itemsize                 # 3 inputs x 2 buffers, per batch row
    tb_budget = (_PIPELINE_VMEM_BUDGET // per_row_bytes) // 8 * 8
    # Keep enough grid steps that both v7x TensorCores get work and each has
    # something to double-buffer against.
    tb_grid = _round_up(pl.cdiv(b, 8), 8)

    if tb_budget >= 64:
        # Whole feature row per tile (single-step reduction axis).
        tb = max(8, min(_TB_CAP, tb_budget, tb_grid))
        return tb, d

    # Huge D: whole rows would force TB toward the 8-row floor (or blow VMEM)
    # -> tile the feature axis too (innermost grid axis, accumulated in VMEM).
    tb = max(8, min(_TB_CAP, 64, tb_grid))
    td_budget = (_PIPELINE_VMEM_BUDGET // (6 * tb * itemsize)) // 128 * 128
    td = max(128, min(td_budget, _round_up(d, 128)))
    return tb, td


def triplet_loss(anchor: jax.Array,
                 positive: jax.Array,
                 negative: jax.Array,
                 margin: float = 1.0,
                 block_b: int | None = None,
                 block_d: int | None = None,
                 pipeline_depth: int | None = None) -> jax.Array:
    """Pallas TPU implementation of TripletLoss.forward. Returns a scalar."""
    assert anchor.shape == positive.shape == negative.shape
    assert anchor.ndim == 2, "expected (batch, feature) inputs"
    b, d = anchor.shape
    itemsize = jnp.dtype(anchor.dtype).itemsize

    auto_tb, auto_td = _choose_tiles(b, d, itemsize)
    tb = block_b if block_b is not None else auto_tb
    td = block_d if block_d is not None else auto_td
    assert tb % 8 == 0, "batch tile must be a multiple of 8 (sublanes)"
    assert td == d or td % 128 == 0, "feature tile must be full-D or a multiple of 128"

    num_b = pl.cdiv(b, tb)
    num_d = pl.cdiv(d, td)

    kernel = functools.partial(
        _triplet_loss_kernel, margin=float(margin),
        true_b=b, true_d=d, block_b=tb, block_d=td,
        need_b_mask=(b % tb != 0), need_d_mask=(d % td != 0))

    # Optional deeper pipelining for very small per-step tiles (sweepable;
    # default leaves the standard 2-deep double buffering untouched).
    spec_kwargs = {}
    if pipeline_depth is not None and pipeline_depth != 2:
        spec_kwargs["pipeline_mode"] = pl.Buffered(pipeline_depth)
    in_spec = pl.BlockSpec((tb, td), lambda i, j: (i, j), **spec_kwargs)

    # Raise the scoped-VMEM limit explicitly (defaults: 16 MiB v5e / 32 MiB
    # v6e+v7x).  Auto-chosen tiles need <= 24 MiB + small scratch, so 32 MiB
    # covers them on every generation and stays far under v7x's 64 MiB VMEM.
    pipeline_bytes = 6 * tb * td * itemsize
    vmem_limit = max(32 * 1024 * 1024, pipeline_bytes + 4 * 1024 * 1024)

    partials = pl.pallas_call(
        kernel,
        out_shape=jax.ShapeDtypeStruct((num_b, 8, 128), jnp.float32),
        grid=(num_b, num_d),
        in_specs=[in_spec, in_spec, in_spec],
        out_specs=pl.BlockSpec((1, 8, 128), lambda i, j: (i, 0, 0)),
        scratch_shapes=[pltpu.VMEM((tb, 1), jnp.float32)],   # running dp - dn per row
        compiler_params=pltpu.CompilerParams(
            dimension_semantics=("parallel", "arbitrary"),
            vmem_limit_bytes=int(vmem_limit)),
    )(anchor, positive, negative)

    # Tiny O(num_b) final reduction + mean over the TRUE batch size.
    return jnp.sum(partials[:, 0, 0]) / b


def _reference(anchor, positive, negative, margin=1.0):
    dp = jnp.sum((anchor - positive) ** 2, axis=1)
    dn = jnp.sum((anchor - negative) ** 2, axis=1)
    return jnp.mean(jnp.maximum(dp - dn + margin, 0.0))


if __name__ == "__main__":
    key = jax.random.PRNGKey(0)
    k_a, k_p, k_n = jax.random.split(key, 3)

    # B not a multiple of 8 -> exercises the batch tail-row mask.
    B, D = 20, 256
    anchor = jax.random.normal(k_a, (B, D), dtype=jnp.float32)
    positive = jax.random.normal(k_p, (B, D), dtype=jnp.float32)
    negative = jax.random.normal(k_n, (B, D), dtype=jnp.float32)

    ref = _reference(anchor, positive, negative, margin=1.0)

    # Default path (auto tile sizes).
    loss = triplet_loss(anchor, positive, negative, margin=1.0)
    jax.block_until_ready(loss)
    assert jnp.allclose(loss, ref, rtol=1e-5, atol=1e-5), (loss, ref)

    # Multi-batch-tile path with an explicit small tile (3 steps, masked tail).
    loss_bt = triplet_loss(anchor, positive, negative, margin=1.0, block_b=8)
    jax.block_until_ready(loss_bt)
    assert jnp.allclose(loss_bt, ref, rtol=1e-5, atol=1e-5), (loss_bt, ref)

    # Feature-tiled path: 2 D-tiles with a masked D tail + VMEM accumulator.
    B2, D2 = 16, 200
    k_a2, k_p2, k_n2 = jax.random.split(jax.random.PRNGKey(0), 3)
    a2 = jax.random.normal(k_a2, (B2, D2), dtype=jnp.float32)
    p2 = jax.random.normal(k_p2, (B2, D2), dtype=jnp.float32)
    n2 = jax.random.normal(k_n2, (B2, D2), dtype=jnp.float32)
    ref2 = _reference(a2, p2, n2, margin=0.5)
    loss_dt = triplet_loss(a2, p2, n2, margin=0.5, block_b=8, block_d=128)
    jax.block_until_ready(loss_dt)
    assert jnp.allclose(loss_dt, ref2, rtol=1e-5, atol=1e-5), (loss_dt, ref2)

    print("KERNEL_OK")
</pallas_src>

<mosaic_0001>
module attributes {stable_mosaic.version = 11 : i64} {
  func.func @_triplet_loss_kernel(%arg0: i32, %arg1: i32, %arg2: memref<8x256xf32, #tpu.memory_space<vmem>>, %arg3: memref<8x256xf32, #tpu.memory_space<vmem>>, %arg4: memref<8x256xf32, #tpu.memory_space<vmem>>, %arg5: memref<1x8x128xf32, #tpu.memory_space<vmem>>, %arg6: memref<8x1xf32, #tpu.memory_space<vmem>>) attributes {dimension_semantics = [#tpu.dimension_semantics<parallel>, #tpu.dimension_semantics<arbitrary>], iteration_bounds = array<i64: 3, 1>, scalar_prefetch = 0 : i64, scratch_operands = 1 : i64, tpu.core_type = #tpu.core_type<tc>, window_params = [{transform_indices = @transform_0, window_bounds = array<i64: 8, 256>}, {transform_indices = @transform_1, window_bounds = array<i64: 8, 256>}, {transform_indices = @transform_2, window_bounds = array<i64: 8, 256>}, {transform_indices = @transform_3, window_bounds = array<i64: 1, 8, 128>}]} {
    %c0_i32 = arith.constant 0 : i32
    %0 = arith.cmpi eq, %arg1, %c0_i32 : i32
    %1 = arith.extui %0 : i1 to i32
    %c0_i32_0 = arith.constant 0 : i32
    %2 = arith.cmpi ne, %1, %c0_i32_0 : i32
    scf.if %2 {
      %cst_12 = arith.constant 0.000000e+00 : f32
      %19 = vector.broadcast %cst_12 : f32 to vector<8x1xf32>
      %c0_13 = arith.constant 0 : index
      %c0_14 = arith.constant 0 : index
      %20 = vector.load %arg6[%c0_13, %c0_14] : memref<8x1xf32, #tpu.memory_space<vmem>>, vector<8x1xf32>
      tpu.vector_store %arg6[%c0_13, %c0_14], %19 {strides = array<i32>} : memref<8x1xf32, #tpu.memory_space<vmem>>, vector<8x1xf32>,
    } else {
    }
    %c0 = arith.constant 0 : index
    %c0_1 = arith.constant 0 : index
    %3 = vector.load %arg2[%c0, %c0_1] : memref<8x256xf32, #tpu.memory_space<vmem>>, vector<8x256xf32>
    %c0_2 = arith.constant 0 : index
    %c0_3 = arith.constant 0 : index
    %4 = vector.load %arg3[%c0_2, %c0_3] : memref<8x256xf32, #tpu.memory_space<vmem>>, vector<8x256xf32>
    %c0_4 = arith.constant 0 : index
    %c0_5 = arith.constant 0 : index
    %5 = vector.load %arg4[%c0_4, %c0_5] : memref<8x256xf32, #tpu.memory_space<vmem>>, vector<8x256xf32>
    %6 = arith.subf %3, %4 : vector<8x256xf32>
    %7 = arith.mulf %6, %6 : vector<8x256xf32>
    %8 = arith.subf %3, %5 : vector<8x256xf32>
    %9 = arith.mulf %8, %8 : vector<8x256xf32>
    %10 = arith.subf %7, %9 : vector<8x256xf32>
    %c0_6 = arith.constant 0 : index
    %c0_7 = arith.constant 0 : index
    %11 = vector.load %arg6[%c0_6, %c0_7] : memref<8x1xf32, #tpu.memory_space<vmem>>, vector<8x1xf32>
    %cst = arith.constant dense<0.000000e+00> : vector<8xf32>
    %12 = vector.multi_reduction <add>, %10, %cst [1] : vector<8x256xf32> to vector<8xf32>
    %13 = vector.shape_cast %12 : vector<8xf32> to vector<8x1xf32>
    %14 = arith.addf %11, %13 : vector<8x1xf32>
    %c0_8 = arith.constant 0 : index
    %c0_9 = arith.constant 0 : index
    %15 = vector.load %arg6[%c0_8, %c0_9] : memref<8x1xf32, #tpu.memory_space<vmem>>, vector<8x1xf32>
    tpu.vector_store %arg6[%c0_8, %c0_9], %14 {strides = array<i32>} : memref<8x1xf32, #tpu.memory_space<vmem>>, vector<8x1xf32>,
    %c0_i32_10 = arith.constant 0 : i32
    %16 = arith.cmpi eq, %arg1, %c0_i32_10 : i32
    %17 = arith.extui %16 : i1 to i32
    %c0_i32_11 = arith.constant 0 : i32
    %18 = arith.cmpi ne, %17, %c0_i32_11 : i32
    scf.if %18 {
      %c0_12 = arith.constant 0 : index
      %c0_13 = arith.constant 0 : index
      %19 = vector.load %arg6[%c0_12, %c0_13] : memref<8x1xf32, #tpu.memory_space<vmem>>, vector<8x1xf32>
      %cst_14 = arith.constant 1.000000e+00 : f32
      %20 = vector.broadcast %cst_14 : f32 to vector<8x1xf32>
      %21 = arith.addf %19, %20 : vector<8x1xf32>
      %cst_15 = arith.constant 0.000000e+00 : f32
      %22 = vector.broadcast %cst_15 : f32 to vector<8x1xf32>
      %23 = arith.maximumf %21, %22 : vector<8x1xf32>
      %c8_i32 = arith.constant 8 : i32
      %24 = arith.muli %arg0, %c8_i32 : i32
      %25 = tpu.iota {dimensions = array<i32: 0>} : vector<8x1xi32>
      %26 = vector.broadcast %24 : i32 to vector<8x1xi32>
      %27 = arith.addi %26, %25 : vector<8x1xi32>
      %c20_i32 = arith.constant 20 : i32
      %28 = vector.broadcast %c20_i32 : i32 to vector<8x1xi32>
      %29 = arith.cmpi slt, %27, %28 : vector<8x1xi32>
      %cst_16 = arith.constant 0.000000e+00 : f32
      %30 = vector.broadcast %cst_16 : f32 to vector<8x1xf32>
      %31 = arith.select %29, %23, %30 : vector<8x1xi1>, vector<8x1xf32>
      %32 = vector.shape_cast %31 : vector<8x1xf32> to vector<1x8x1xf32>
      %cst_17 = arith.constant dense<0.000000e+00> : vector<1xf32>
      %33 = vector.multi_reduction <add>, %32, %cst_17 [1, 2] : vector<1x8x1xf32> to vector<1xf32>
      %34 = vector.shape_cast %33 : vector<1xf32> to vector<1x1x1xf32>
      %35 = vector.extract %34[0, 0, 0] : f32 from vector<1x1x1xf32>
      %36 = vector.broadcast %35 : f32 to vector<1x8x128xf32>
      %c0_18 = arith.constant 0 : index
      %c0_19 = arith.constant 0 : index
      %c0_20 = arith.constant 0 : index
      %37 = vector.load %arg5[%c0_18, %c0_19, %c0_20] : memref<1x8x128xf32, #tpu.memory_space<vmem>>, vector<1x8x128xf32>
      tpu.vector_store %arg5[%c0_18, %c0_19, %c0_20], %36 {strides = array<i32>} : memref<1x8x128xf32, #tpu.memory_space<vmem>>, vector<1x8x128xf32>,
    } else {
    }
    return
  }
  func.func @transform_0(%arg0: i32, %arg1: i32) -> (i32, i32) {
    %c0_i32 = arith.constant 0 : i32
    return %arg0, %arg1 : i32, i32
  }
  func.func @transform_1(%arg0: i32, %arg1: i32) -> (i32, i32) {
    %c0_i32 = arith.constant 0 : i32
    return %arg0, %arg1 : i32, i32
  }
  func.func @transform_2(%arg0: i32, %arg1: i32) -> (i32, i32) {
    %c0_i32 = arith.constant 0 : i32
    return %arg0, %arg1 : i32, i32
  }
  func.func @transform_3(%arg0: i32, %arg1: i32) -> (i32, i32, i32) {
    %c0_i32 = arith.constant 0 : i32
    %c0_i32_0 = arith.constant 0 : i32
    %c0_i32_1 = arith.constant 0 : i32
    return %arg0, %c0_i32, %c0_i32_0 : i32, i32, i32
  }
}

</mosaic_0001>

<bundles_post_ra>
// kernel: tpu_custom_call.1
= control target key start
LH: loop header
LB: loop body
LE: loop exit
PB: predicated region body
PF: predicated region fallthrough
CT: control target
= control target key end

     0   :  { %s982_s0 = inlined_call_operand.hbm [shape: f32[20,256], index: 0, kind: input, shape index: {}]   ;;  %s983_s1 = inlined_call_operand.hbm [shape: f32[20,256], index: 1, kind: input, shape index: {}]   ;;  %s984_s2 = inlined_call_operand.hbm [shape: f32[20,256], index: 2, kind: input, shape index: {}]   ;;  %s985_s3 = inlined_call_operand.hbm [shape: f32[3,8,128], index: 3, kind: output, shape index: {}]  }
   0x1   :  { %989 = sst [smem:[#allocation15_spill]] %s983_s1 }
   0x2   :  { %8 = vsyncpa [#allocation4], 0 }
   0x3   :  { %10 = vsyncpa [#allocation4 + $0x1], 0 }
   0x4   :  { %11 = vsyncpa [#allocation7], 0 }
   0x5   :  { %13 = vsyncpa [#allocation7 + $0x1], 0 }
   0x6   :  { %14 = vsyncpa [#allocation5], 0 }
   0x7   :  { %16 = vsyncpa [#allocation5 + $0x1], 0  ;;  %s781_s12 = smov 0   ;;  %s783_s13 = smov 0  }
   0x8   :  { %s785_s14 = smov 0   ;;  %s787_s15 = smov 0  }
   0x9   :  { %s789_s16 = smov 0   ;;  %s791_s17 = smov 0  }
   0xa LB: > { %990 = sst [smem:[#allocation13_spill]] %s750_s16  ;;  %s812_s18 = sadd.s32 4294967295, %s754_s17   ;;  %s754_s17 = sphi %s791_s17, %s22_s17   ;;  %s750_s16 = sphi %s789_s16, %s1001_s16   ;;  %s746_s15 = sphi %s787_s15, %s1000_s15   ;;  %s742_s14 = sphi %s785_s14, %s1004_s14   ;;  %s738_s13 = sphi %s783_s13, %s1003_s13   ;;  %s734_s12 = sphi %s781_s12, %s1002_s12  }
   0xb   : > { %s486_s19 = sadd.s32 4294967294, %s754_s17   ;;  %s34_s20 = sadd.s32 1, %s750_s16 }
   0xc   : > { %s43_s21 = sadd.s32 1, %s742_s14  ;;  %p36_p0 = scmp.ge.s32.totalorder %s34_s20, 3 }
   0xd   : > { %p50_p1 = scmp.ne.s32.totalorder %s742_s14, %s738_s13  ;;  %p51_p2 = scmp.eq.s32.totalorder %s754_s17, 0 }
   0xe   : > { %p56_p3 = scmp.ne.s32.totalorder %s738_s13, %s734_s12  ;;  %s1006_s20 = smov (%p36_p0, %s34_s20), 0 }
   0xf   : > { %991 = sst [smem:[#allocation14_spill]] %s1006_s20  ;;  %p824_p4 = por %p51_p2, %p50_p1 }
  0x10   : > { %p57_p5 = scmp.eq.s32.totalorder %s812_s18, 0  ;;  %s38_s23 = ssub.s32 %s750_s16, %s1006_s20 }
  0x11   : > { %p136_p6 = scmp.eq.s32.totalorder %s812_s18, 2  ;;  %p41_p7 = scmp.eq.s32.totalorder %s38_s23, 0 }
  0x12   : > { %p832_p8 = por %p57_p5, %p56_p3  ;;  %p142_p10 = scmp.eq.s32.totalorder %s486_s19, 2 }
  0x13   : > { %p836_p9 = por %p136_p6, %p50_p1  ;;  %p535_p12 = scmp.lt.s32.totalorder %s754_s17, 3 }
  0x14   : > { %s841_s26 = scalar_select %p41_p7, %s742_s14, %s43_s21  }
  0x15   : > { %p843_p11 = por %p142_p10, %p56_p3  ;;  %s986_s28 = sand.u32 1, %s742_s14  }
  0x16   : > { %s851_s29 = sshll.u32 %s986_s28, 4  ;;  %s854_s30 = sshll.u32 %s750_s16, 8 }
  0x17   : > { %p858_p13 = pnand %p535_p12, %p824_p4  ;;  %s183_s5 = sand.u32 1, %s754_s17  }
  0x18   : > { %s997_s1 = sld [smem:[#allocation15_spill]]  ;;  %s187_s9 = scalar_lea.vmem [#allocation6], %s851_s29 }
  0x19   : > { %s197_s10 = sshll.u32 %s187_s9, 4  ;;  %p498_p0 = scmp.ge.s32.totalorder %s754_s17, 1  ;;  %s198_s10 = int_to_ptr.vmem [resolvable:$true] %s197_s10 }
  0x1a   : > { %p223_p1 = scmp.lt.s32.totalorder %s754_s17, 4  ;;  %s870_s11 = scalar_lea.sflag [#allocation7], %s183_s5 }
  0x1b   : > { %p588_p2 = pneg %p858_p13  ;;  %s599_s19 = scalar_lea.vmem %s198_s10, 256 }
  0x1c   : > { %p600_p3 = scmp.ne.s32.totalorder %s198_s10, %s599_s19  ;;  %s756_s21 = smov [#allocation6]  }
  0x1d   : > { %s604_s22 = sshll.u32 %s756_s21, 4  ;;  %s605_s22 = int_to_ptr.vmem [resolvable:$false] %s604_s22 }
  0x1e   : > { %s195_s8 = scalar_lea.hbm %s997_s1, %s854_s30  ;;  %p602_p4 = pnand %p600_p3, %p588_p2 }
  0x1f   : > { %s606_s23 = scalar_lea.vmem %s605_s22, 512  ;;  %p607_p6 = scmp.lt.s32.totalorder %s198_s10, %s605_s22 }
  0x20   : > { %p603_p5 = pneg %p602_p4  ;;  %p608_p7 = scmp.lt.s32.totalorder %s606_s23, %s599_s19 }
  0x22   : > { %p609_p10 = por %p608_p7, %p607_p6 }
  0x24   : > { %p610_p12 = pnand %p609_p10, %p603_p5 }
  0x26   : > { %613 = shalt.err (!%p610_p12)
}
  0x27   : > { %527 = dma.hbm_to_vmem [thread:$0]  (!%p858_p13), %s195_s8, 256, %s198_s10, %s870_s11  }
  0x28   : > { %p884_p3 = pnand %p498_p0, %p223_p1  ;;  %s174_s9 = scalar_lea.hbm %s982_s0, %s854_s30 }
  0x29   : > { %s166_s19 = scalar_lea.vmem [#allocation3], %s851_s29  ;;  %s216_s28 = scalar_lea.hbm %s984_s2, %s854_s30 }
  0x2a   : > { %s176_s21 = sshll.u32 %s166_s19, 4  ;;  %s999_s1 = sand.u32 1, %s742_s14   ;;  %s177_s21 = int_to_ptr.vmem [resolvable:$true] %s176_s21 }
  0x2b   : > { %s163_s20 = scalar_lea.sflag [#allocation4], %s999_s1  ;;  %s627_s8 = scalar_lea.vmem %s177_s21, 256 }
  0x2c   : > { %p628_p4 = scmp.ne.s32.totalorder %s177_s21, %s627_s8  ;;  %s757_s10 = smov [#allocation3]  }
  0x2d   : > { %s632_s16 = sshll.u32 %s757_s10, 4  ;;  %s633_s16 = int_to_ptr.vmem [resolvable:$false] %s632_s16 }
  0x2e   : > { %p630_p0 = pnand %p628_p4, %p588_p2  ;;  %s634_s6 = scalar_lea.vmem %s633_s16, 512 }
  0x2f   : > { %p635_p5 = scmp.lt.s32.totalorder %s177_s21, %s633_s16  ;;  %p636_p6 = scmp.lt.s32.totalorder %s634_s6, %s627_s8 }
  0x30   : > { %p631_p1 = pneg %p630_p0 }
  0x31   : > { %p637_p7 = por %p636_p6, %p635_p5 }
  0x33   : > { %p638_p10 = pnand %p637_p7, %p631_p1 }
  0x35   : > { %641 = shalt.err (!%p638_p10)
}
  0x36   : > { %524 = dma.hbm_to_vmem [thread:$0]  (!%p858_p13), %s174_s9, 256, %s177_s21, %s163_s20  }
  0x37   : > { %s208_s1 = scalar_lea.vmem [#allocation8], %s851_s29  ;;  %s758_s22 = smov [#allocation8]  }
  0x38   : > { %s218_s7 = sshll.u32 %s208_s1, 4  ;;  %s660_s16 = sshll.u32 %s758_s22, 4  ;;  %s219_s7 = int_to_ptr.vmem [resolvable:$true] %s218_s7  ;;  %s661_s16 = int_to_ptr.vmem [resolvable:$false] %s660_s16 }
  0x39   : > { %s655_s19 = scalar_lea.vmem %s219_s7, 256  ;;  %s662_s23 = scalar_lea.vmem %s661_s16, 512 }
  0x3a   : > { %p656_p12 = scmp.ne.s32.totalorder %s219_s7, %s655_s19  ;;  %p663_p1 = scmp.lt.s32.totalorder %s219_s7, %s661_s16 }
  0x3b   : > { %p664_p5 = scmp.lt.s32.totalorder %s662_s23, %s655_s19 }
  0x3c   : > { %p658_p4 = pnand %p656_p12, %p588_p2 }
  0x3d   : > { %p665_p6 = por %p664_p5, %p663_p1 }
  0x3e   : > { %p659_p0 = pneg %p658_p4 }
  0x40   : > { %p666_p7 = pnand %p665_p6, %p659_p0 }
  0x42   : > { %669 = shalt.err (!%p666_p7)
}
  0x43   : > { %530 = dma.hbm_to_vmem [thread:$0]  (!%p858_p13), %s216_s28, 256, %s219_s7, %s870_s11  }
  0x44   : > { %227 = sbr.rel (%p884_p3) target bundleno = 456 (0x1c8), region = 32  ;;  %s919_s9 = sand.u32 (!%p884_p3), 1, %s738_s13  }
  0x45   : > { %s499_s21 = sshll.u32 (!%p884_p3), %s919_s9, 4  ;;  %s230_s8 = scalar_lea.sflag (!%p884_p3), [#allocation4], %s919_s9 }
  0x46   : > { %s233_s10 = scalar_lea.vmem (!%p884_p3), [#allocation3], %s499_s21 }
  0x49   : > { %721 = dma.done.wait (%p832_p8), %s230_s8, 256  }
  0x4a   : > { %723 = vsyncadd (%p832_p8), %s230_s8, 4294967040  ;;  %s238_s28 = sand.u32 1, %s812_s18   ;;  %s242_s4 = scalar_lea.vmem [#allocation6], %s499_s21 }
  0x4b   : > { %s239_s30 = scalar_lea.sflag [#allocation7], %s238_s28 }
  0x4c   : > { %725 = dma.done.wait (%p832_p8), %s239_s30, 512  }
  0x4d   : > { %727 = vsyncadd (%p832_p8), %s239_s30, 4294966784  ;;  %vm291_vm0 = vcmask 7168   ;;  %v759_v0 = vmov 0.0   ;;  %v293_v1 = vld [vmem:[%s233_s10] sm:$0xff]  ;;  %v294_v2 = vld [vmem:[%s233_s10 + $0x8] sm:$0xff]  ;;  %s251_s11 = scalar_lea.vmem [#allocation8], %s499_s21  ;;  %v323_v20 = vlaneseq }
  0x4e   : > { %292 = vst.msk [vmem:[#allocation2] sm:$0xff] %vm291_vm0, %v759_v0  ;;  %v295_v3 = vld [vmem:[%s242_s4] sm:$0xff]  ;;  %v296_v4 = vld [vmem:[%s242_s4 + $0x8] sm:$0xff]  ;;  %s503_s18 = sshll.u32 %s746_s15, 3  ;;  %s502_s24 = sshll.u32 %s919_s9, 3 }
  0x4f   : > { %v297_v5 = vld [vmem:[%s251_s11] sm:$0xff]  ;;  %v298_v6 = vld [vmem:[%s251_s11 + $0x8] sm:$0xff]  ;;  %v299_v7 = vsub.f32 %v293_v1, %v295_v3  ;;  %v300_v8 = vsub.f32 %v294_v2, %v296_v4  ;;  %v324_v22 = vshrl.u32 %v323_v20, 7  ;;  %v325_v23 = vstv %s503_s18  ;;  %s283_s5 = scalar_lea.vmem [#allocation9], %s502_s24  ;;  %s505_s1 = sshll.u32 %s746_s15, 7 }
  0x50   : > { %v303_v9 = vsub.f32 %v293_v1, %v297_v5  ;;  %v304_v10 = vsub.f32 %v294_v2, %v298_v6  ;;  %s355_s6 = sshll.u32 %s283_s5, 4  ;;  %s353_s16 = scalar_lea.hbm %s985_s3, %s505_s1  ;;  %s938_s6 = int_to_ptr.vmem [resolvable:$true] %s355_s6 }
  0x51   : > { %v301_v11 = vmul.f32 %v299_v7, %v299_v7  ;;  %v302_v12 = vmul.f32 %v300_v8, %v300_v8  ;;  %v326_v24 = vadd.s32 %v325_v23, %v324_v22  ;;  %s342_s23 = scalar_lea.sflag [#allocation5], %s919_s9  ;;  %s670_s20 = scalar_lea.vmem %s938_s6, 128 }
  0x52   : > { %v305_v13 = vmul.f32 %v303_v9, %v303_v9  ;;  %v306_v14 = vmul.f32 %v304_v10, %v304_v10  ;;  %p671_p8 = scmp.ne.s32.totalorder %s938_s6, %s670_s20  ;;  %s760_s29 = smov [#allocation9]  }
  0x53   : > { %vm327_vm1 = vcmp.lt.s32.totalorder %v326_v24, 20  ;;  %s674_s15 = sshll.u32 %s760_s29, 4  ;;  %s675_s15 = int_to_ptr.vmem [resolvable:$false] %s674_s15 }
  0x54   : > { %v307_v15 = vsub.f32 %v301_v11, %v305_v13  ;;  %v308_v16 = vsub.f32 %v302_v12, %v306_v14  ;;  %p672_p13 = pnand %p671_p8, %p836_p9  ;;  %s676_s21 = scalar_lea.vmem %s675_s15, 256 }
  0x55   : > { %v309_v18 = vld [vmem:[#allocation2] sm:$0xff]  ;;  %p677_p3 = scmp.lt.s32.totalorder %s938_s6, %s675_s15  ;;  %p678_p10 = scmp.lt.s32.totalorder %s676_s21, %s670_s20 }
  0x56   : > { %v310_v17 = vadd.f32 %v308_v16, %v307_v15  ;;  %p673_p2 = pneg %p672_p13 }
  0x57   : > { %p679_p12 = por %p678_p10, %p677_p3 }
  0x58   : > { %311 = vadd.xlane.f32.xlu0 %v310_v17 }
  0x59   : > { %p680_p4 = pnand %p679_p12, %p673_p2 }
  0xe1   : > { %v312_v19 = vpop.xlane.xlu0 %311 }
  0xe2   : > { %v313_v21 = vadd.f32 %v312_v19, %v309_v18 }
  0xe4   : > { %315 = vst.msk [vmem:[#allocation2] sm:$0xff] %vm291_vm0, %v313_v21 }
  0xeb   : > { %v319_v25 = vld [vmem:[#allocation2] sm:$0xff] }
  0xec   : > { %v320_v26 = vadd.f32 1.0, %v319_v25 }
  0xee   : > { %v321_v27 = vmax.f32 %v320_v26, 0.0 }
  0xf0   : > { %v328_v28 = vsel %vm327_vm1, %v321_v27, 0.0 }
  0xf1   : > { %v329_v29 = vsel %vm291_vm0, %v328_v28, 0.0 }
  0xf2   : > { %330 = vadd.xlane.f32.xlu0 %v329_v29 }
 0x17b   : > { %v331_v30 = vpop.xlane.xlu0 %330 }
 0x17c   : > { %v332_v31 = vrot.slane %v331_v30, 4 }
 0x17e   : > { %v333_v32 = vadd.f32 %v332_v31, %v331_v30 }
 0x180   : > { %v334_v33 = vrot.slane %v333_v32, 2 }
 0x182   : > { %v335_v34 = vadd.f32 %v334_v33, %v333_v32 }
 0x184   : > { %v336_v35 = vrot.slane %v335_v34, 1 }
 0x186   : > { %v337_v36 = vadd.f32 %v336_v35, %v335_v34 }
 0x188   : > { %511 = vpush %v337_v36 }
 0x1b9   : > { %s512_s7 = spop %511 }
 0x1ba   : > { %v339_v37 = vstv %s512_s7 }
 0x1bb   : > { %340 = vst [vmem:[%s283_s5] sm:$0xff] %v339_v37 }
 0x1bc   : > { %683 = shalt.err (!%p680_p4)
}
 0x1bd   : > { %s684_s8 = scalar_lea.hbm %s353_s16, 128  ;;  %s688_s28 = scalar_lea.hbm %s985_s3, 384 }
 0x1be   : > { %p685_p0 = scmp.ne.s32.totalorder %s353_s16, %s684_s8  ;;  %p689_p6 = scmp.lt.s32.totalorder %s353_s16, %s985_s3 }
 0x1bf   : > { %p690_p7 = scmp.lt.s32.totalorder %s688_s28, %s684_s8 }
 0x1c0   : > { %p686_p1 = pnand %p685_p0, %p836_p9 }
 0x1c1   : > { %p691_p8 = por %p690_p7, %p689_p6 }
 0x1c2   : > { %p687_p5 = pneg %p686_p1 }
 0x1c4   : > { %p692_p13 = pnand %p691_p8, %p687_p5 }
 0x1c6   : > { %695 = shalt.err (!%p692_p13)
}
 0x1c7   : > { %519 = dma.vmem_to_hbm [thread:$0]  (%p836_p9), %s938_s6, 128, %s353_s16, %s342_s23  }
 0x1c8 PF: > { %p536_p2 = scmp.ge.s32.totalorder %s754_s17, 2  ;;  %s367_s11 = sand.u32 1, %s734_s12  }
 0x1c9   : > { %s368_s18 = scalar_lea.sflag [#allocation5], %s367_s11 }
 0x1ca   : > { %p532_p3 = pnand %p536_p2, %p843_p11 }
 0x1cc   : > { %p533_p10 = pneg %p532_p3 }
 0x1ce   : > { %729 = dma.done.wait (%p533_p10), %s368_s18, 128  }
 0x1cf   : > { %731 = vsyncadd (%p533_p10), %s368_s18, 4294967168  ;;  %s22_s17 = sadd.s32 1, %s754_s17   ;;  %s1000_s15 = sld [smem:[#allocation13_spill]] }
 0x1d0   : > { %p19_p12 = scmp.ge.s32.totalorder %s22_s17, 5   ;;  %s1001_s16 = sld [smem:[#allocation14_spill]] }
 0x1d1   : > { %s1002_s12 = smov %s738_s13  ;;  %s1003_s13 = smov %s742_s14 }
 0x1d2   : > { %s1004_s14 = smov %s841_s26  ;;  %21 = sbr.rel (!%p19_p12) target bundleno = 10 (0xa), region = 109 }
 0x1d7   :  { %373 = vsyncpa [#allocation4], 1 }
 0x1d8   :  { %375 = vsyncpa [#allocation4 + $0x1], 1 }
 0x1d9   :  { %376 = vsyncpa [#allocation7], 1 }
 0x1da   :  { %378 = vsyncpa [#allocation7 + $0x1], 1 }
 0x1db   :  { %379 = vsyncpa [#allocation5], 1 }
 0x1dc   :  { %381 = vsyncpa [#allocation5 + $0x1], 1 }

</bundles_post_ra>
